<compile_context>
chip_gen: v7x
topology: tpu7x:2x2x1
jax: 0.10.0
libtpu: 0.0.40
codegen_flags: <defaults>
</compile_context>

<pallas_src>
import functools

import jax
import jax.numpy as jnp
import numpy as np
from jax.experimental import pallas as pl
from jax.experimental.pallas import tpu as pltpu


# ----------------------------------------------------------------------------
# Pallas kernel
# ----------------------------------------------------------------------------
def bilstm_mlp_kernel(
    x2_ref,      # (T*B, 2D)  rows t*B..: [x_t | x_{T-1-t}]
    wih_ref,     # (2D, 8H)   block-diag input->gates, gate cols [i|f|g|o] x [fwd|bwd]
    whh_ref,     # (2H, 8H)   block-diag hidden->gates
    bias_ref,    # (1, 8H)    combined b_ih + b_hh, same column layout
    w1f_ref,     # (H, H)     fc1^T rows 0:H   (forward half)
    w1b_ref,     # (H, H)     fc1^T rows H:2H  (backward half)
    b1_ref,      # (1, H)
    w2_ref,      # (H, 128)   fc2^T padded to 128 lanes (cols 2.. are zero)
    b2_ref,      # (1, 128)
    out_ref,     # (T*B, 128) lane-dense output; wrapper slices [:, :2]
    hf_buf,      # scratch (T*B, H) forward hidden states (natural time order)
    hb_buf,      # scratch (T*B, H) backward hidden states (natural time order)
    *, T, B, H,
):
    G = 8 * H  # fused gate width

    # ---- hoisted input projection + bias (both directions, all timesteps) ---
    gx = jnp.dot(x2_ref[...], wih_ref[...],
                 preferred_element_type=jnp.float32) + bias_ref[...]  # (T*B, 8H)

    whh = whh_ref[...]                                        # load once
    lane = jax.lax.broadcasted_iota(jnp.int32, (B, G), 1)
    g_mask = (lane >= 4 * H) & (lane < 6 * H)                 # tanh ('g') lanes

    h = jnp.zeros((B, 2 * H), jnp.float32)                    # [h_fwd | h_bwd]
    c = jnp.zeros((B, 2 * H), jnp.float32)

    # ---- fused fwd+bwd recurrence, fully unrolled (T static) ----------------
    for t in range(T):
        gates = (jnp.dot(h, whh, preferred_element_type=jnp.float32)
                 + gx[t * B:(t + 1) * B, :])                  # (B, 8H)
        # One EUP tanh pass; sigmoid(x) = 0.5*(tanh(0.5x)+1) for i/f/o lanes.
        z = jnp.tanh(jnp.where(g_mask, gates, 0.5 * gates))
        act = jnp.where(g_mask, z, 0.5 * (z + 1.0))
        i = act[:, 0 * H:2 * H]
        f = act[:, 2 * H:4 * H]
        g = act[:, 4 * H:6 * H]
        o = act[:, 6 * H:8 * H]
        c = f * c + i * g
        h = o * jnp.tanh(c)
        # forward state belongs to time t, backward state to time T-1-t
        hf_buf[t * B:(t + 1) * B, :] = h[:, :H]
        hb_buf[(T - 1 - t) * B:(T - t) * B, :] = h[:, H:]

    # ---- batched MLP head over all timesteps at once -------------------------
    yf = jnp.maximum(hf_buf[...], 0.0)                        # (T*B, H)
    yb = jnp.maximum(hb_buf[...], 0.0)
    y = (jnp.dot(yf, w1f_ref[...], preferred_element_type=jnp.float32)
         + jnp.dot(yb, w1b_ref[...], preferred_element_type=jnp.float32)
         + b1_ref[...])
    y = jnp.maximum(y, 0.0)
    y = jnp.dot(y, w2_ref[...], preferred_element_type=jnp.float32) + b2_ref[...]
    zz = jnp.tanh(0.5 * y)
    out_ref[...] = 0.5 * (zz + 1.0)                           # sigmoid, lane-dense store


# ----------------------------------------------------------------------------
# Wrapper: param packing + layout plumbing, then one pallas_call
# ----------------------------------------------------------------------------
def _pack_params(params, D, H):
    (wih_f, whh_f, b_f, wih_b, whh_b, b_b, w1f, w1b, b1, w2, b2) = params
    zdh = jnp.zeros((D, H), jnp.float32)
    zhh = jnp.zeros((H, H), jnp.float32)
    wih_blocks, whh_blocks, b_blocks = [], [], []
    for gi in range(4):                       # gate order i, f, g, o
        s = slice(gi * H, (gi + 1) * H)
        wih_blocks.append(jnp.concatenate([
            jnp.concatenate([wih_f[:, s], zdh], axis=1),
            jnp.concatenate([zdh, wih_b[:, s]], axis=1)], axis=0))    # (2D, 2H)
        whh_blocks.append(jnp.concatenate([
            jnp.concatenate([whh_f[:, s], zhh], axis=1),
            jnp.concatenate([zhh, whh_b[:, s]], axis=1)], axis=0))    # (2H, 2H)
        b_blocks.append(jnp.concatenate([b_f[:, s], b_b[:, s]], axis=1))
    wih_p = jnp.concatenate(wih_blocks, axis=1)   # (2D, 8H)
    whh_p = jnp.concatenate(whh_blocks, axis=1)   # (2H, 8H)
    bias_p = jnp.concatenate(b_blocks, axis=1)    # (1, 8H)
    # lane-dense fc2: pad (H, 2) -> (H, 128), (1, 2) -> (1, 128)
    w2_p = jnp.zeros((H, 128), jnp.float32).at[:, :2].set(w2)
    b2_p = jnp.zeros((1, 128), jnp.float32).at[:, :2].set(b2)
    return wih_p, whh_p, bias_p, w1f, w1b, b1, w2_p, b2_p


@functools.partial(jax.jit, static_argnames=("hidden_size",))
def bilstm_mlp_forward(x, params, *, hidden_size):
    """x: (B, T, D) float32 -> (B, T, 2) float32."""
    B, T, D = x.shape
    H = hidden_size
    packed = _pack_params(params, D, H)

    x_tm = jnp.transpose(x, (1, 0, 2))                       # (T, B, D) time-major
    x2 = jnp.concatenate([x_tm, x_tm[::-1]], axis=-1)        # (T, B, 2D)
    x2 = x2.reshape(T * B, 2 * D)

    kernel = functools.partial(bilstm_mlp_kernel, T=T, B=B, H=H)
    vmem = pl.BlockSpec(memory_space=pltpu.MemorySpace.VMEM)
    # TODO(synk): for large T/B add a 'parallel' grid axis (v7x 2nd TensorCore)
    # and BlockSpec time tiling; at this size everything fits one grid point.
    out = pl.pallas_call(
        kernel,
        out_shape=jax.ShapeDtypeStruct((T * B, 128), jnp.float32),
        in_specs=[vmem] * 9,
        out_specs=vmem,
        scratch_shapes=[
            pltpu.VMEM((T * B, H), jnp.float32),   # hf_buf
            pltpu.VMEM((T * B, H), jnp.float32),   # hb_buf
        ],
    )(x2, *packed)
    out = out.reshape(T, B, 128)[:, :, :2]
    return jnp.transpose(out, (1, 0, 2))


# ----------------------------------------------------------------------------
# Pure-JAX reference (for correctness check)
# ----------------------------------------------------------------------------
def reference_forward(x, params):
    (wih_f, whh_f, b_f, wih_b, whh_b, b_b, w1f, w1b, b1, w2, b2) = params
    B, T, D = x.shape
    H = whh_f.shape[0]

    def make_step(wih, whh, b):
        def step(carry, xt):
            h, c = carry
            gates = xt @ wih + h @ whh + b
            i, f, g, o = jnp.split(gates, 4, axis=-1)
            i, f, o = jax.nn.sigmoid(i), jax.nn.sigmoid(f), jax.nn.sigmoid(o)
            g = jnp.tanh(g)
            c = f * c + i * g
            h = o * jnp.tanh(c)
            return (h, c), h
        return step

    x_t = jnp.transpose(x, (1, 0, 2))  # (T, B, D)
    h0 = jnp.zeros((B, H), jnp.float32)
    c0 = jnp.zeros((B, H), jnp.float32)
    _, hf = jax.lax.scan(make_step(wih_f, whh_f, b_f), (h0, c0), x_t)
    _, hb_rev = jax.lax.scan(make_step(wih_b, whh_b, b_b), (h0, c0), x_t[::-1])
    hb = hb_rev[::-1]

    y = jnp.maximum(jnp.concatenate([hf, hb], axis=-1), 0.0)   # (T, B, 2H)
    w1 = jnp.concatenate([w1f, w1b], axis=0)                    # (2H, H)
    y = jnp.maximum(y @ w1 + b1, 0.0)
    y = jax.nn.sigmoid(y @ w2 + b2)                             # (T, B, 2)
    return jnp.transpose(y, (1, 0, 2))


# ----------------------------------------------------------------------------
# Deterministic parameter construction (shapes from _Model.__init__)
# ----------------------------------------------------------------------------
def make_params(key, input_dim, hidden_size):
    D, H = input_dim, hidden_size
    ks = jax.random.split(key, 14)
    k_lstm = 1.0 / np.sqrt(H)
    k_fc1 = 1.0 / np.sqrt(2 * H)
    k_fc2 = 1.0 / np.sqrt(H)

    def u(k, shape, bound):
        return jax.random.uniform(k, shape, jnp.float32, -bound, bound)

    # LSTM weights stored pre-transposed: (in, 4H) / (H, 4H); biases combined.
    wih_f = u(ks[0], (D, 4 * H), k_lstm)
    whh_f = u(ks[1], (H, 4 * H), k_lstm)
    b_f = u(ks[2], (1, 4 * H), k_lstm) + u(ks[3], (1, 4 * H), k_lstm)
    wih_b = u(ks[4], (D, 4 * H), k_lstm)
    whh_b = u(ks[5], (H, 4 * H), k_lstm)
    b_b = u(ks[6], (1, 4 * H), k_lstm) + u(ks[7], (1, 4 * H), k_lstm)

    # fc1: Linear(2H, H) -> weight^T is (2H, H); split into fwd/bwd halves.
    w1 = u(ks[8], (2 * H, H), k_fc1)
    w1f, w1b = w1[:H], w1[H:]
    b1 = u(ks[9], (1, H), k_fc1)

    # fc2: Linear(H, 2) -> weight^T is (H, 2)
    w2 = u(ks[10], (H, 2), k_fc2)
    b2 = u(ks[11], (1, 2), k_fc2)

    return (wih_f, whh_f, b_f, wih_b, whh_b, b_b, w1f, w1b, b1, w2, b2)


# ----------------------------------------------------------------------------
if __name__ == "__main__":
    B, T, D, H = 2, 8, 4, 32

    key = jax.random.PRNGKey(0)
    k_x, k_p = jax.random.split(key)
    x = jax.random.normal(k_x, (B, T, D), jnp.float32)
    params = make_params(k_p, D, H)

    out = bilstm_mlp_forward(x, params, hidden_size=H)
    out = jax.block_until_ready(out)

    ref = jax.block_until_ready(reference_forward(x, params))
    np.testing.assert_allclose(np.asarray(out), np.asarray(ref),
                               rtol=1e-3, atol=1e-3)
    assert out.shape == (B, T, 2)

    print("KERNEL_OK")
</pallas_src>

<mosaic_0001>
module attributes {stable_mosaic.version = 11 : i64} {
  func.func @bilstm_mlp_kernel(%arg0: memref<16x8xf32, #tpu.memory_space<vmem>>, %arg1: memref<8x256xf32, #tpu.memory_space<vmem>>, %arg2: memref<64x256xf32, #tpu.memory_space<vmem>>, %arg3: memref<1x256xf32, #tpu.memory_space<vmem>>, %arg4: memref<32x32xf32, #tpu.memory_space<vmem>>, %arg5: memref<32x32xf32, #tpu.memory_space<vmem>>, %arg6: memref<1x32xf32, #tpu.memory_space<vmem>>, %arg7: memref<32x128xf32, #tpu.memory_space<vmem>>, %arg8: memref<1x128xf32, #tpu.memory_space<vmem>>, %arg9: memref<16x128xf32, #tpu.memory_space<vmem>>, %arg10: memref<16x32xf32, #tpu.memory_space<vmem>>, %arg11: memref<16x32xf32, #tpu.memory_space<vmem>>) attributes {dimension_semantics = [], scalar_prefetch = 0 : i64, scratch_operands = 2 : i64, tpu.core_type = #tpu.core_type<tc>} {
    %c0 = arith.constant 0 : index
    %c0_0 = arith.constant 0 : index
    %0 = vector.load %arg0[%c0, %c0_0] : memref<16x8xf32, #tpu.memory_space<vmem>>, vector<16x8xf32>
    %c0_1 = arith.constant 0 : index
    %c0_2 = arith.constant 0 : index
    %1 = vector.load %arg1[%c0_1, %c0_2] : memref<8x256xf32, #tpu.memory_space<vmem>>, vector<8x256xf32>
    %cst = arith.constant dense<0.000000e+00> : vector<16x256xf32>
    %2 = tpu.matmul %0, %1, %cst {dimension_numbers = #tpu.dot_dimension_numbers<[1], [0], [0], [1], [0, 0, 1, 1], [], []>} : vector<16x8xf32>, vector<8x256xf32>, vector<16x256xf32> -> vector<16x256xf32>
    %c0_3 = arith.constant 0 : index
    %c0_4 = arith.constant 0 : index
    %3 = vector.load %arg3[%c0_3, %c0_4] : memref<1x256xf32, #tpu.memory_space<vmem>>, vector<1x256xf32>
    %4 = vector.broadcast %3 : vector<1x256xf32> to vector<16x256xf32>
    %5 = arith.addf %2, %4 : vector<16x256xf32>
    %c0_5 = arith.constant 0 : index
    %c0_6 = arith.constant 0 : index
    %6 = vector.load %arg2[%c0_5, %c0_6] : memref<64x256xf32, #tpu.memory_space<vmem>>, vector<64x256xf32>
    %7 = tpu.iota {dimensions = array<i32: 1>} : vector<2x256xi32>
    %c128_i32 = arith.constant 128 : i32
    %8 = vector.broadcast %c128_i32 : i32 to vector<2x256xi32>
    %9 = arith.cmpi sge, %7, %8 : vector<2x256xi32>
    %c192_i32 = arith.constant 192 : i32
    %10 = vector.broadcast %c192_i32 : i32 to vector<2x256xi32>
    %11 = arith.cmpi slt, %7, %10 : vector<2x256xi32>
    %12 = arith.andi %9, %11 : vector<2x256xi1>
    %cst_7 = arith.constant 0.000000e+00 : f32
    %13 = vector.broadcast %cst_7 : f32 to vector<2x64xf32>
    %cst_8 = arith.constant 0.000000e+00 : f32
    %14 = vector.broadcast %cst_8 : f32 to vector<2x64xf32>
    %cst_9 = arith.constant dense<0.000000e+00> : vector<2x256xf32>
    %15 = tpu.matmul %13, %6, %cst_9 {dimension_numbers = #tpu.dot_dimension_numbers<[1], [0], [0], [1], [0, 0, 1, 1], [], []>} : vector<2x64xf32>, vector<64x256xf32>, vector<2x256xf32> -> vector<2x256xf32>
    %16 = vector.extract_strided_slice %5 {offsets = [0, 0], sizes = [2, 256], strides = [1, 1]} : vector<16x256xf32> to vector<2x256xf32>
    %17 = arith.addf %15, %16 : vector<2x256xf32>
    %cst_10 = arith.constant 5.000000e-01 : f32
    %18 = vector.broadcast %cst_10 : f32 to vector<2x256xf32>
    %19 = arith.mulf %18, %17 : vector<2x256xf32>
    %20 = arith.select %12, %17, %19 : vector<2x256xi1>, vector<2x256xf32>
    %21 = math.tanh %20 : vector<2x256xf32>
    %cst_11 = arith.constant 1.000000e+00 : f32
    %22 = vector.broadcast %cst_11 : f32 to vector<2x256xf32>
    %23 = arith.addf %21, %22 : vector<2x256xf32>
    %cst_12 = arith.constant 5.000000e-01 : f32
    %24 = vector.broadcast %cst_12 : f32 to vector<2x256xf32>
    %25 = arith.mulf %24, %23 : vector<2x256xf32>
    %26 = arith.select %12, %21, %25 : vector<2x256xi1>, vector<2x256xf32>
    %27 = vector.extract_strided_slice %26 {offsets = [0, 0], sizes = [2, 64], strides = [1, 1]} : vector<2x256xf32> to vector<2x64xf32>
    %28 = vector.extract_strided_slice %26 {offsets = [0, 64], sizes = [2, 64], strides = [1, 1]} : vector<2x256xf32> to vector<2x64xf32>
    %29 = vector.extract_strided_slice %26 {offsets = [0, 128], sizes = [2, 64], strides = [1, 1]} : vector<2x256xf32> to vector<2x64xf32>
    %30 = vector.extract_strided_slice %26 {offsets = [0, 192], sizes = [2, 64], strides = [1, 1]} : vector<2x256xf32> to vector<2x64xf32>
    %31 = arith.mulf %28, %14 : vector<2x64xf32>
    %32 = arith.mulf %27, %29 : vector<2x64xf32>
    %33 = arith.addf %31, %32 : vector<2x64xf32>
    %34 = math.tanh %33 : vector<2x64xf32>
    %35 = arith.mulf %30, %34 : vector<2x64xf32>
    %36 = vector.extract_strided_slice %35 {offsets = [0, 0], sizes = [2, 32], strides = [1, 1]} : vector<2x64xf32> to vector<2x32xf32>
    %c0_13 = arith.constant 0 : index
    %c0_14 = arith.constant 0 : index
    %37 = vector.load %arg10[%c0_13, %c0_14] : memref<16x32xf32, #tpu.memory_space<vmem>>, vector<2x32xf32>
    tpu.vector_store %arg10[%c0_13, %c0_14], %36 {strides = array<i32>} : memref<16x32xf32, #tpu.memory_space<vmem>>, vector<2x32xf32>,
    %38 = vector.extract_strided_slice %35 {offsets = [0, 32], sizes = [2, 32], strides = [1, 1]} : vector<2x64xf32> to vector<2x32xf32>
    %c14 = arith.constant 14 : index
    %c0_15 = arith.constant 0 : index
    %39 = vector.load %arg11[%c14, %c0_15] : memref<16x32xf32, #tpu.memory_space<vmem>>, vector<2x32xf32>
    tpu.vector_store %arg11[%c14, %c0_15], %38 {strides = array<i32>} : memref<16x32xf32, #tpu.memory_space<vmem>>, vector<2x32xf32>,
    %cst_16 = arith.constant dense<0.000000e+00> : vector<2x256xf32>
    %40 = tpu.matmul %35, %6, %cst_16 {dimension_numbers = #tpu.dot_dimension_numbers<[1], [0], [0], [1], [0, 0, 1, 1], [], []>} : vector<2x64xf32>, vector<64x256xf32>, vector<2x256xf32> -> vector<2x256xf32>
    %41 = vector.extract_strided_slice %5 {offsets = [2, 0], sizes = [2, 256], strides = [1, 1]} : vector<16x256xf32> to vector<2x256xf32>
    %42 = arith.addf %40, %41 : vector<2x256xf32>
    %cst_17 = arith.constant 5.000000e-01 : f32
    %43 = vector.broadcast %cst_17 : f32 to vector<2x256xf32>
    %44 = arith.mulf %43, %42 : vector<2x256xf32>
    %45 = arith.select %12, %42, %44 : vector<2x256xi1>, vector<2x256xf32>
    %46 = math.tanh %45 : vector<2x256xf32>
    %cst_18 = arith.constant 1.000000e+00 : f32
    %47 = vector.broadcast %cst_18 : f32 to vector<2x256xf32>
    %48 = arith.addf %46, %47 : vector<2x256xf32>
    %cst_19 = arith.constant 5.000000e-01 : f32
    %49 = vector.broadcast %cst_19 : f32 to vector<2x256xf32>
    %50 = arith.mulf %49, %48 : vector<2x256xf32>
    %51 = arith.select %12, %46, %50 : vector<2x256xi1>, vector<2x256xf32>
    %52 = vector.extract_strided_slice %51 {offsets = [0, 0], sizes = [2, 64], strides = [1, 1]} : vector<2x256xf32> to vector<2x64xf32>
    %53 = vector.extract_strided_slice %51 {offsets = [0, 64], sizes = [2, 64], strides = [1, 1]} : vector<2x256xf32> to vector<2x64xf32>
    %54 = vector.extract_strided_slice %51 {offsets = [0, 128], sizes = [2, 64], strides = [1, 1]} : vector<2x256xf32> to vector<2x64xf32>
    %55 = vector.extract_strided_slice %51 {offsets = [0, 192], sizes = [2, 64], strides = [1, 1]} : vector<2x256xf32> to vector<2x64xf32>
    %56 = arith.mulf %53, %33 : vector<2x64xf32>
    %57 = arith.mulf %52, %54 : vector<2x64xf32>
    %58 = arith.addf %56, %57 : vector<2x64xf32>
    %59 = math.tanh %58 : vector<2x64xf32>
    %60 = arith.mulf %55, %59 : vector<2x64xf32>
    %61 = vector.extract_strided_slice %60 {offsets = [0, 0], sizes = [2, 32], strides = [1, 1]} : vector<2x64xf32> to vector<2x32xf32>
    %c2 = arith.constant 2 : index
    %c0_20 = arith.constant 0 : index
    %62 = vector.load %arg10[%c2, %c0_20] : memref<16x32xf32, #tpu.memory_space<vmem>>, vector<2x32xf32>
    tpu.vector_store %arg10[%c2, %c0_20], %61 {strides = array<i32>} : memref<16x32xf32, #tpu.memory_space<vmem>>, vector<2x32xf32>,
    %63 = vector.extract_strided_slice %60 {offsets = [0, 32], sizes = [2, 32], strides = [1, 1]} : vector<2x64xf32> to vector<2x32xf32>
    %c12 = arith.constant 12 : index
    %c0_21 = arith.constant 0 : index
    %64 = vector.load %arg11[%c12, %c0_21] : memref<16x32xf32, #tpu.memory_space<vmem>>, vector<2x32xf32>
    tpu.vector_store %arg11[%c12, %c0_21], %63 {strides = array<i32>} : memref<16x32xf32, #tpu.memory_space<vmem>>, vector<2x32xf32>,
    %cst_22 = arith.constant dense<0.000000e+00> : vector<2x256xf32>
    %65 = tpu.matmul %60, %6, %cst_22 {dimension_numbers = #tpu.dot_dimension_numbers<[1], [0], [0], [1], [0, 0, 1, 1], [], []>} : vector<2x64xf32>, vector<64x256xf32>, vector<2x256xf32> -> vector<2x256xf32>
    %66 = vector.extract_strided_slice %5 {offsets = [4, 0], sizes = [2, 256], strides = [1, 1]} : vector<16x256xf32> to vector<2x256xf32>
    %67 = arith.addf %65, %66 : vector<2x256xf32>
    %cst_23 = arith.constant 5.000000e-01 : f32
    %68 = vector.broadcast %cst_23 : f32 to vector<2x256xf32>
    %69 = arith.mulf %68, %67 : vector<2x256xf32>
    %70 = arith.select %12, %67, %69 : vector<2x256xi1>, vector<2x256xf32>
    %71 = math.tanh %70 : vector<2x256xf32>
    %cst_24 = arith.constant 1.000000e+00 : f32
    %72 = vector.broadcast %cst_24 : f32 to vector<2x256xf32>
    %73 = arith.addf %71, %72 : vector<2x256xf32>
    %cst_25 = arith.constant 5.000000e-01 : f32
    %74 = vector.broadcast %cst_25 : f32 to vector<2x256xf32>
    %75 = arith.mulf %74, %73 : vector<2x256xf32>
    %76 = arith.select %12, %71, %75 : vector<2x256xi1>, vector<2x256xf32>
    %77 = vector.extract_strided_slice %76 {offsets = [0, 0], sizes = [2, 64], strides = [1, 1]} : vector<2x256xf32> to vector<2x64xf32>
    %78 = vector.extract_strided_slice %76 {offsets = [0, 64], sizes = [2, 64], strides = [1, 1]} : vector<2x256xf32> to vector<2x64xf32>
    %79 = vector.extract_strided_slice %76 {offsets = [0, 128], sizes = [2, 64], strides = [1, 1]} : vector<2x256xf32> to vector<2x64xf32>
    %80 = vector.extract_strided_slice %76 {offsets = [0, 192], sizes = [2, 64], strides = [1, 1]} : vector<2x256xf32> to vector<2x64xf32>
    %81 = arith.mulf %78, %58 : vector<2x64xf32>
    %82 = arith.mulf %77, %79 : vector<2x64xf32>
    %83 = arith.addf %81, %82 : vector<2x64xf32>
    %84 = math.tanh %83 : vector<2x64xf32>
    %85 = arith.mulf %80, %84 : vector<2x64xf32>
    %86 = vector.extract_strided_slice %85 {offsets = [0, 0], sizes = [2, 32], strides = [1, 1]} : vector<2x64xf32> to vector<2x32xf32>
    %c4 = arith.constant 4 : index
    %c0_26 = arith.constant 0 : index
    %87 = vector.load %arg10[%c4, %c0_26] : memref<16x32xf32, #tpu.memory_space<vmem>>, vector<2x32xf32>
    tpu.vector_store %arg10[%c4, %c0_26], %86 {strides = array<i32>} : memref<16x32xf32, #tpu.memory_space<vmem>>, vector<2x32xf32>,
    %88 = vector.extract_strided_slice %85 {offsets = [0, 32], sizes = [2, 32], strides = [1, 1]} : vector<2x64xf32> to vector<2x32xf32>
    %c10 = arith.constant 10 : index
    %c0_27 = arith.constant 0 : index
    %89 = vector.load %arg11[%c10, %c0_27] : memref<16x32xf32, #tpu.memory_space<vmem>>, vector<2x32xf32>
    tpu.vector_store %arg11[%c10, %c0_27], %88 {strides = array<i32>} : memref<16x32xf32, #tpu.memory_space<vmem>>, vector<2x32xf32>,
    %cst_28 = arith.constant dense<0.000000e+00> : vector<2x256xf32>
    %90 = tpu.matmul %85, %6, %cst_28 {dimension_numbers = #tpu.dot_dimension_numbers<[1], [0], [0], [1], [0, 0, 1, 1], [], []>} : vector<2x64xf32>, vector<64x256xf32>, vector<2x256xf32> -> vector<2x256xf32>
    %91 = vector.extract_strided_slice %5 {offsets = [6, 0], sizes = [2, 256], strides = [1, 1]} : vector<16x256xf32> to vector<2x256xf32>
    %92 = arith.addf %90, %91 : vector<2x256xf32>
    %cst_29 = arith.constant 5.000000e-01 : f32
    %93 = vector.broadcast %cst_29 : f32 to vector<2x256xf32>
    %94 = arith.mulf %93, %92 : vector<2x256xf32>
    %95 = arith.select %12, %92, %94 : vector<2x256xi1>, vector<2x256xf32>
    %96 = math.tanh %95 : vector<2x256xf32>
    %cst_30 = arith.constant 1.000000e+00 : f32
    %97 = vector.broadcast %cst_30 : f32 to vector<2x256xf32>
    %98 = arith.addf %96, %97 : vector<2x256xf32>
    %cst_31 = arith.constant 5.000000e-01 : f32
    %99 = vector.broadcast %cst_31 : f32 to vector<2x256xf32>
    %100 = arith.mulf %99, %98 : vector<2x256xf32>
    %101 = arith.select %12, %96, %100 : vector<2x256xi1>, vector<2x256xf32>
    %102 = vector.extract_strided_slice %101 {offsets = [0, 0], sizes = [2, 64], strides = [1, 1]} : vector<2x256xf32> to vector<2x64xf32>
    %103 = vector.extract_strided_slice %101 {offsets = [0, 64], sizes = [2, 64], strides = [1, 1]} : vector<2x256xf32> to vector<2x64xf32>
    %104 = vector.extract_strided_slice %101 {offsets = [0, 128], sizes = [2, 64], strides = [1, 1]} : vector<2x256xf32> to vector<2x64xf32>
    %105 = vector.extract_strided_slice %101 {offsets = [0, 192], sizes = [2, 64], strides = [1, 1]} : vector<2x256xf32> to vector<2x64xf32>
    %106 = arith.mulf %103, %83 : vector<2x64xf32>
    %107 = arith.mulf %102, %104 : vector<2x64xf32>
    %108 = arith.addf %106, %107 : vector<2x64xf32>
    %109 = math.tanh %108 : vector<2x64xf32>
    %110 = arith.mulf %105, %109 : vector<2x64xf32>
    %111 = vector.extract_strided_slice %110 {offsets = [0, 0], sizes = [2, 32], strides = [1, 1]} : vector<2x64xf32> to vector<2x32xf32>
    %c6 = arith.constant 6 : index
    %c0_32 = arith.constant 0 : index
    %112 = vector.load %arg10[%c6, %c0_32] : memref<16x32xf32, #tpu.memory_space<vmem>>, vector<2x32xf32>
    tpu.vector_store %arg10[%c6, %c0_32], %111 {strides = array<i32>} : memref<16x32xf32, #tpu.memory_space<vmem>>, vector<2x32xf32>,
    %113 = vector.extract_strided_slice %110 {offsets = [0, 32], sizes = [2, 32], strides = [1, 1]} : vector<2x64xf32> to vector<2x32xf32>
    %c8 = arith.constant 8 : index
    %c0_33 = arith.constant 0 : index
    %114 = vector.load %arg11[%c8, %c0_33] : memref<16x32xf32, #tpu.memory_space<vmem>>, vector<2x32xf32>
    tpu.vector_store %arg11[%c8, %c0_33], %113 {strides = array<i32>} : memref<16x32xf32, #tpu.memory_space<vmem>>, vector<2x32xf32>,
    %cst_34 = arith.constant dense<0.000000e+00> : vector<2x256xf32>
    %115 = tpu.matmul %110, %6, %cst_34 {dimension_numbers = #tpu.dot_dimension_numbers<[1], [0], [0], [1], [0, 0, 1, 1], [], []>} : vector<2x64xf32>, vector<64x256xf32>, vector<2x256xf32> -> vector<2x256xf32>
    %116 = vector.extract_strided_slice %5 {offsets = [8, 0], sizes = [2, 256], strides = [1, 1]} : vector<16x256xf32> to vector<2x256xf32>
    %117 = arith.addf %115, %116 : vector<2x256xf32>
    %cst_35 = arith.constant 5.000000e-01 : f32
    %118 = vector.broadcast %cst_35 : f32 to vector<2x256xf32>
    %119 = arith.mulf %118, %117 : vector<2x256xf32>
    %120 = arith.select %12, %117, %119 : vector<2x256xi1>, vector<2x256xf32>
    %121 = math.tanh %120 : vector<2x256xf32>
    %cst_36 = arith.constant 1.000000e+00 : f32
    %122 = vector.broadcast %cst_36 : f32 to vector<2x256xf32>
    %123 = arith.addf %121, %122 : vector<2x256xf32>
    %cst_37 = arith.constant 5.000000e-01 : f32
    %124 = vector.broadcast %cst_37 : f32 to vector<2x256xf32>
    %125 = arith.mulf %124, %123 : vector<2x256xf32>
    %126 = arith.select %12, %121, %125 : vector<2x256xi1>, vector<2x256xf32>
    %127 = vector.extract_strided_slice %126 {offsets = [0, 0], sizes = [2, 64], strides = [1, 1]} : vector<2x256xf32> to vector<2x64xf32>
    %128 = vector.extract_strided_slice %126 {offsets = [0, 64], sizes = [2, 64], strides = [1, 1]} : vector<2x256xf32> to vector<2x64xf32>
    %129 = vector.extract_strided_slice %126 {offsets = [0, 128], sizes = [2, 64], strides = [1, 1]} : vector<2x256xf32> to vector<2x64xf32>
    %130 = vector.extract_strided_slice %126 {offsets = [0, 192], sizes = [2, 64], strides = [1, 1]} : vector<2x256xf32> to vector<2x64xf32>
    %131 = arith.mulf %128, %108 : vector<2x64xf32>
    %132 = arith.mulf %127, %129 : vector<2x64xf32>
    %133 = arith.addf %131, %132 : vector<2x64xf32>
    %134 = math.tanh %133 : vector<2x64xf32>
    %135 = arith.mulf %130, %134 : vector<2x64xf32>
    %136 = vector.extract_strided_slice %135 {offsets = [0, 0], sizes = [2, 32], strides = [1, 1]} : vector<2x64xf32> to vector<2x32xf32>
    %c8_38 = arith.constant 8 : index
    %c0_39 = arith.constant 0 : index
    %137 = vector.load %arg10[%c8_38, %c0_39] : memref<16x32xf32, #tpu.memory_space<vmem>>, vector<2x32xf32>
    tpu.vector_store %arg10[%c8_38, %c0_39], %136 {strides = array<i32>} : memref<16x32xf32, #tpu.memory_space<vmem>>, vector<2x32xf32>,
    %138 = vector.extract_strided_slice %135 {offsets = [0, 32], sizes = [2, 32], strides = [1, 1]} : vector<2x64xf32> to vector<2x32xf32>
    %c6_40 = arith.constant 6 : index
    %c0_41 = arith.constant 0 : index
    %139 = vector.load %arg11[%c6_40, %c0_41] : memref<16x32xf32, #tpu.memory_space<vmem>>, vector<2x32xf32>
    tpu.vector_store %arg11[%c6_40, %c0_41], %138 {strides = array<i32>} : memref<16x32xf32, #tpu.memory_space<vmem>>, vector<2x32xf32>,
    %cst_42 = arith.constant dense<0.000000e+00> : vector<2x256xf32>
    %140 = tpu.matmul %135, %6, %cst_42 {dimension_numbers = #tpu.dot_dimension_numbers<[1], [0], [0], [1], [0, 0, 1, 1], [], []>} : vector<2x64xf32>, vector<64x256xf32>, vector<2x256xf32> -> vector<2x256xf32>
    %141 = vector.extract_strided_slice %5 {offsets = [10, 0], sizes = [2, 256], strides = [1, 1]} : vector<16x256xf32> to vector<2x256xf32>
    %142 = arith.addf %140, %141 : vector<2x256xf32>
    %cst_43 = arith.constant 5.000000e-01 : f32
    %143 = vector.broadcast %cst_43 : f32 to vector<2x256xf32>
    %144 = arith.mulf %143, %142 : vector<2x256xf32>
    %145 = arith.select %12, %142, %144 : vector<2x256xi1>, vector<2x256xf32>
    %146 = math.tanh %145 : vector<2x256xf32>
    %cst_44 = arith.constant 1.000000e+00 : f32
    %147 = vector.broadcast %cst_44 : f32 to vector<2x256xf32>
    %148 = arith.addf %146, %147 : vector<2x256xf32>
    %cst_45 = arith.constant 5.000000e-01 : f32
    %149 = vector.broadcast %cst_45 : f32 to vector<2x256xf32>
    %150 = arith.mulf %149, %148 : vector<2x256xf32>
    %151 = arith.select %12, %146, %150 : vector<2x256xi1>, vector<2x256xf32>
    %152 = vector.extract_strided_slice %151 {offsets = [0, 0], sizes = [2, 64], strides = [1, 1]} : vector<2x256xf32> to vector<2x64xf32>
    %153 = vector.extract_strided_slice %151 {offsets = [0, 64], sizes = [2, 64], strides = [1, 1]} : vector<2x256xf32> to vector<2x64xf32>
    %154 = vector.extract_strided_slice %151 {offsets = [0, 128], sizes = [2, 64], strides = [1, 1]} : vector<2x256xf32> to vector<2x64xf32>
    %155 = vector.extract_strided_slice %151 {offsets = [0, 192], sizes = [2, 64], strides = [1, 1]} : vector<2x256xf32> to vector<2x64xf32>
    %156 = arith.mulf %153, %133 : vector<2x64xf32>
    %157 = arith.mulf %152, %154 : vector<2x64xf32>
    %158 = arith.addf %156, %157 : vector<2x64xf32>
    %159 = math.tanh %158 : vector<2x64xf32>
    %160 = arith.mulf %155, %159 : vector<2x64xf32>
    %161 = vector.extract_strided_slice %160 {offsets = [0, 0], sizes = [2, 32], strides = [1, 1]} : vector<2x64xf32> to vector<2x32xf32>
    %c10_46 = arith.constant 10 : index
    %c0_47 = arith.constant 0 : index
    %162 = vector.load %arg10[%c10_46, %c0_47] : memref<16x32xf32, #tpu.memory_space<vmem>>, vector<2x32xf32>
    tpu.vector_store %arg10[%c10_46, %c0_47], %161 {strides = array<i32>} : memref<16x32xf32, #tpu.memory_space<vmem>>, vector<2x32xf32>,
    %163 = vector.extract_strided_slice %160 {offsets = [0, 32], sizes = [2, 32], strides = [1, 1]} : vector<2x64xf32> to vector<2x32xf32>
    %c4_48 = arith.constant 4 : index
    %c0_49 = arith.constant 0 : index
    %164 = vector.load %arg11[%c4_48, %c0_49] : memref<16x32xf32, #tpu.memory_space<vmem>>, vector<2x32xf32>
    tpu.vector_store %arg11[%c4_48, %c0_49], %163 {strides = array<i32>} : memref<16x32xf32, #tpu.memory_space<vmem>>, vector<2x32xf32>,
    %cst_50 = arith.constant dense<0.000000e+00> : vector<2x256xf32>
    %165 = tpu.matmul %160, %6, %cst_50 {dimension_numbers = #tpu.dot_dimension_numbers<[1], [0], [0], [1], [0, 0, 1, 1], [], []>} : vector<2x64xf32>, vector<64x256xf32>, vector<2x256xf32> -> vector<2x256xf32>
    %166 = vector.extract_strided_slice %5 {offsets = [12, 0], sizes = [2, 256], strides = [1, 1]} : vector<16x256xf32> to vector<2x256xf32>
    %167 = arith.addf %165, %166 : vector<2x256xf32>
    %cst_51 = arith.constant 5.000000e-01 : f32
    %168 = vector.broadcast %cst_51 : f32 to vector<2x256xf32>
    %169 = arith.mulf %168, %167 : vector<2x256xf32>
    %170 = arith.select %12, %167, %169 : vector<2x256xi1>, vector<2x256xf32>
    %171 = math.tanh %170 : vector<2x256xf32>
    %cst_52 = arith.constant 1.000000e+00 : f32
    %172 = vector.broadcast %cst_52 : f32 to vector<2x256xf32>
    %173 = arith.addf %171, %172 : vector<2x256xf32>
    %cst_53 = arith.constant 5.000000e-01 : f32
    %174 = vector.broadcast %cst_53 : f32 to vector<2x256xf32>
    %175 = arith.mulf %174, %173 : vector<2x256xf32>
    %176 = arith.select %12, %171, %175 : vector<2x256xi1>, vector<2x256xf32>
    %177 = vector.extract_strided_slice %176 {offsets = [0, 0], sizes = [2, 64], strides = [1, 1]} : vector<2x256xf32> to vector<2x64xf32>
    %178 = vector.extract_strided_slice %176 {offsets = [0, 64], sizes = [2, 64], strides = [1, 1]} : vector<2x256xf32> to vector<2x64xf32>
    %179 = vector.extract_strided_slice %176 {offsets = [0, 128], sizes = [2, 64], strides = [1, 1]} : vector<2x256xf32> to vector<2x64xf32>
    %180 = vector.extract_strided_slice %176 {offsets = [0, 192], sizes = [2, 64], strides = [1, 1]} : vector<2x256xf32> to vector<2x64xf32>
    %181 = arith.mulf %178, %158 : vector<2x64xf32>
    %182 = arith.mulf %177, %179 : vector<2x64xf32>
    %183 = arith.addf %181, %182 : vector<2x64xf32>
    %184 = math.tanh %183 : vector<2x64xf32>
    %185 = arith.mulf %180, %184 : vector<2x64xf32>
    %186 = vector.extract_strided_slice %185 {offsets = [0, 0], sizes = [2, 32], strides = [1, 1]} : vector<2x64xf32> to vector<2x32xf32>
    %c12_54 = arith.constant 12 : index
    %c0_55 = arith.constant 0 : index
    %187 = vector.load %arg10[%c12_54, %c0_55] : memref<16x32xf32, #tpu.memory_space<vmem>>, vector<2x32xf32>
    tpu.vector_store %arg10[%c12_54, %c0_55], %186 {strides = array<i32>} : memref<16x32xf32, #tpu.memory_space<vmem>>, vector<2x32xf32>,
    %188 = vector.extract_strided_slice %185 {offsets = [0, 32], sizes = [2, 32], strides = [1, 1]} : vector<2x64xf32> to vector<2x32xf32>
    %c2_56 = arith.constant 2 : index
    %c0_57 = arith.constant 0 : index
    %189 = vector.load %arg11[%c2_56, %c0_57] : memref<16x32xf32, #tpu.memory_space<vmem>>, vector<2x32xf32>
    tpu.vector_store %arg11[%c2_56, %c0_57], %188 {strides = array<i32>} : memref<16x32xf32, #tpu.memory_space<vmem>>, vector<2x32xf32>,
    %cst_58 = arith.constant dense<0.000000e+00> : vector<2x256xf32>
    %190 = tpu.matmul %185, %6, %cst_58 {dimension_numbers = #tpu.dot_dimension_numbers<[1], [0], [0], [1], [0, 0, 1, 1], [], []>} : vector<2x64xf32>, vector<64x256xf32>, vector<2x256xf32> -> vector<2x256xf32>
    %191 = vector.extract_strided_slice %5 {offsets = [14, 0], sizes = [2, 256], strides = [1, 1]} : vector<16x256xf32> to vector<2x256xf32>
    %192 = arith.addf %190, %191 : vector<2x256xf32>
    %cst_59 = arith.constant 5.000000e-01 : f32
    %193 = vector.broadcast %cst_59 : f32 to vector<2x256xf32>
    %194 = arith.mulf %193, %192 : vector<2x256xf32>
    %195 = arith.select %12, %192, %194 : vector<2x256xi1>, vector<2x256xf32>
    %196 = math.tanh %195 : vector<2x256xf32>
    %cst_60 = arith.constant 1.000000e+00 : f32
    %197 = vector.broadcast %cst_60 : f32 to vector<2x256xf32>
    %198 = arith.addf %196, %197 : vector<2x256xf32>
    %cst_61 = arith.constant 5.000000e-01 : f32
    %199 = vector.broadcast %cst_61 : f32 to vector<2x256xf32>
    %200 = arith.mulf %199, %198 : vector<2x256xf32>
    %201 = arith.select %12, %196, %200 : vector<2x256xi1>, vector<2x256xf32>
    %202 = vector.extract_strided_slice %201 {offsets = [0, 0], sizes = [2, 64], strides = [1, 1]} : vector<2x256xf32> to vector<2x64xf32>
    %203 = vector.extract_strided_slice %201 {offsets = [0, 64], sizes = [2, 64], strides = [1, 1]} : vector<2x256xf32> to vector<2x64xf32>
    %204 = vector.extract_strided_slice %201 {offsets = [0, 128], sizes = [2, 64], strides = [1, 1]} : vector<2x256xf32> to vector<2x64xf32>
    %205 = vector.extract_strided_slice %201 {offsets = [0, 192], sizes = [2, 64], strides = [1, 1]} : vector<2x256xf32> to vector<2x64xf32>
    %206 = arith.mulf %203, %183 : vector<2x64xf32>
    %207 = arith.mulf %202, %204 : vector<2x64xf32>
    %208 = arith.addf %206, %207 : vector<2x64xf32>
    %209 = math.tanh %208 : vector<2x64xf32>
    %210 = arith.mulf %205, %209 : vector<2x64xf32>
    %211 = vector.extract_strided_slice %210 {offsets = [0, 0], sizes = [2, 32], strides = [1, 1]} : vector<2x64xf32> to vector<2x32xf32>
    %c14_62 = arith.constant 14 : index
    %c0_63 = arith.constant 0 : index
    %212 = vector.load %arg10[%c14_62, %c0_63] : memref<16x32xf32, #tpu.memory_space<vmem>>, vector<2x32xf32>
    tpu.vector_store %arg10[%c14_62, %c0_63], %211 {strides = array<i32>} : memref<16x32xf32, #tpu.memory_space<vmem>>, vector<2x32xf32>,
    %213 = vector.extract_strided_slice %210 {offsets = [0, 32], sizes = [2, 32], strides = [1, 1]} : vector<2x64xf32> to vector<2x32xf32>
    %c0_64 = arith.constant 0 : index
    %c0_65 = arith.constant 0 : index
    %214 = vector.load %arg11[%c0_64, %c0_65] : memref<16x32xf32, #tpu.memory_space<vmem>>, vector<2x32xf32>
    tpu.vector_store %arg11[%c0_64, %c0_65], %213 {strides = array<i32>} : memref<16x32xf32, #tpu.memory_space<vmem>>, vector<2x32xf32>,
    %c0_66 = arith.constant 0 : index
    %c0_67 = arith.constant 0 : index
    %215 = vector.load %arg10[%c0_66, %c0_67] : memref<16x32xf32, #tpu.memory_space<vmem>>, vector<16x32xf32>
    %cst_68 = arith.constant 0.000000e+00 : f32
    %216 = vector.broadcast %cst_68 : f32 to vector<16x32xf32>
    %217 = arith.maximumf %215, %216 : vector<16x32xf32>
    %c0_69 = arith.constant 0 : index
    %c0_70 = arith.constant 0 : index
    %218 = vector.load %arg11[%c0_69, %c0_70] : memref<16x32xf32, #tpu.memory_space<vmem>>, vector<16x32xf32>
    %cst_71 = arith.constant 0.000000e+00 : f32
    %219 = vector.broadcast %cst_71 : f32 to vector<16x32xf32>
    %220 = arith.maximumf %218, %219 : vector<16x32xf32>
    %c0_72 = arith.constant 0 : index
    %c0_73 = arith.constant 0 : index
    %221 = vector.load %arg4[%c0_72, %c0_73] : memref<32x32xf32, #tpu.memory_space<vmem>>, vector<32x32xf32>
    %cst_74 = arith.constant dense<0.000000e+00> : vector<16x32xf32>
    %222 = tpu.matmul %217, %221, %cst_74 {dimension_numbers = #tpu.dot_dimension_numbers<[1], [0], [0], [1], [0, 0, 1, 1], [], []>} : vector<16x32xf32>, vector<32x32xf32>, vector<16x32xf32> -> vector<16x32xf32>
    %c0_75 = arith.constant 0 : index
    %c0_76 = arith.constant 0 : index
    %223 = vector.load %arg5[%c0_75, %c0_76] : memref<32x32xf32, #tpu.memory_space<vmem>>, vector<32x32xf32>
    %cst_77 = arith.constant dense<0.000000e+00> : vector<16x32xf32>
    %224 = tpu.matmul %220, %223, %cst_77 {dimension_numbers = #tpu.dot_dimension_numbers<[1], [0], [0], [1], [0, 0, 1, 1], [], []>} : vector<16x32xf32>, vector<32x32xf32>, vector<16x32xf32> -> vector<16x32xf32>
    %225 = arith.addf %222, %224 : vector<16x32xf32>
    %c0_78 = arith.constant 0 : index
    %c0_79 = arith.constant 0 : index
    %226 = vector.load %arg6[%c0_78, %c0_79] : memref<1x32xf32, #tpu.memory_space<vmem>>, vector<1x32xf32>
    %227 = vector.broadcast %226 : vector<1x32xf32> to vector<16x32xf32>
    %228 = arith.addf %225, %227 : vector<16x32xf32>
    %cst_80 = arith.constant 0.000000e+00 : f32
    %229 = vector.broadcast %cst_80 : f32 to vector<16x32xf32>
    %230 = arith.maximumf %228, %229 : vector<16x32xf32>
    %c0_81 = arith.constant 0 : index
    %c0_82 = arith.constant 0 : index
    %231 = vector.load %arg7[%c0_81, %c0_82] : memref<32x128xf32, #tpu.memory_space<vmem>>, vector<32x128xf32>
    %cst_83 = arith.constant dense<0.000000e+00> : vector<16x128xf32>
    %232 = tpu.matmul %230, %231, %cst_83 {dimension_numbers = #tpu.dot_dimension_numbers<[1], [0], [0], [1], [0, 0, 1, 1], [], []>} : vector<16x32xf32>, vector<32x128xf32>, vector<16x128xf32> -> vector<16x128xf32>
    %c0_84 = arith.constant 0 : index
    %c0_85 = arith.constant 0 : index
    %233 = vector.load %arg8[%c0_84, %c0_85] : memref<1x128xf32, #tpu.memory_space<vmem>>, vector<1x128xf32>
    %234 = vector.broadcast %233 : vector<1x128xf32> to vector<16x128xf32>
    %235 = arith.addf %232, %234 : vector<16x128xf32>
    %cst_86 = arith.constant 5.000000e-01 : f32
    %236 = vector.broadcast %cst_86 : f32 to vector<16x128xf32>
    %237 = arith.mulf %236, %235 : vector<16x128xf32>
    %238 = math.tanh %237 : vector<16x128xf32>
    %cst_87 = arith.constant 1.000000e+00 : f32
    %239 = vector.broadcast %cst_87 : f32 to vector<16x128xf32>
    %240 = arith.addf %238, %239 : vector<16x128xf32>
    %cst_88 = arith.constant 5.000000e-01 : f32
    %241 = vector.broadcast %cst_88 : f32 to vector<16x128xf32>
    %242 = arith.mulf %241, %240 : vector<16x128xf32>
    %c0_89 = arith.constant 0 : index
    %c0_90 = arith.constant 0 : index
    %243 = vector.load %arg9[%c0_89, %c0_90] : memref<16x128xf32, #tpu.memory_space<vmem>>, vector<16x128xf32>
    tpu.vector_store %arg9[%c0_89, %c0_90], %242 {strides = array<i32>} : memref<16x128xf32, #tpu.memory_space<vmem>>, vector<16x128xf32>,
    return
  }
}

</mosaic_0001>

<bundles_post_ra>
// kernel: bilstm_mlp_forward.1
= control target key start
LH: loop header
LB: loop body
LE: loop exit
PB: predicated region body
PF: predicated region fallthrough
CT: control target
= control target key end

     0   :  { %v1585_v3 = vmov 0.0   ;;  %vm48_vm0 = vcmask 64512   ;;  %v38_v28 = vlaneseq  ;;  %vm257_vm2 = vcmask 254976   ;;  %s1992_s2 = inlined_call_operand.vmem [shape: f32[64,256], index: 2, kind: input, shape index: {}]   ;;  %s1993_s1 = inlined_call_operand.vmem [shape: f32[8,256], index: 1, kind: input, shape index: {}]   ;;  %s1994_s0 = inlined_call_operand.vmem [shape: f32[16,8], index: 0, kind: input, shape index: {}]   ;;  %s1995_s3 = inlined_call_operand.vmem [shape: f32[1,256], index: 3, kind: input, shape index: {}]   ;;  %s1996_s5 = inlined_call_operand.vmem [shape: f32[32,32], index: 5, kind: input, shape index: {}]   ;;  %s1997_s4 = inlined_call_operand.vmem [shape: f32[32,32], index: 4, kind: input, shape index: {}]   ;;  %s1998_s7 = inlined_call_operand.vmem [shape: f32[32,128], index: 7, kind: input, shape index: {}]   ;;  %s1999_s6 = inlined_call_operand.vmem [shape: f32[1,32], index: 6, kind: input, shape index: {}]   ;;  %s2000_s8 = inlined_call_operand.vmem [shape: f32[1,128], index: 8, kind: input, shape index: {}]   ;;  %s2001_s9 = inlined_call_operand.vmem [shape: f32[16,128], index: 9, kind: output, shape index: {}]  }
   0x1   :  { %v133_v0 = vld [vmem:[%s1992_s2 + $0x8] sm:$0xff]  ;;  %v135_v1 = vld [vmem:[%s1992_s2 + $0x18] sm:$0xff]  ;;  %v132_v2 = vld [vmem:[%s1992_s2] sm:$0xff]  ;;  %119 = vmatprep.mubr.f32.mxu0 %v1585_v3  ;;  %225 = vmatprep.mubr.f32.mxu1 %v1585_v3  ;;  %vm157_vm3 = vcmask 523264   ;;  %vm1028_vm4 = vcmask 261120  }
   0x2   :  { %v1649_v4 = vpack.c.bf16 %v135_v1, %v133_v0  ;;  %v134_v5 = vld [vmem:[%s1992_s2 + $0x10] sm:$0xff]  ;;  %v137_v6 = vld [vmem:[%s1992_s2 + $0x28] sm:$0xff]  ;;  %v139_v7 = vld [vmem:[%s1992_s2 + $0x38] sm:$0xff]  ;;  %v39_v29 = vshrl.u32 %v38_v28, 7  ;;  %v149_v37 = vand.u32 127, %v38_v28 }
   0x3   :  { %v1660_v8 = vpack.c.bf16 %v134_v5, %v132_v2  ;;  %v1662_v9 = vpack.c.bf16 %v139_v7, %v137_v6  ;;  %v136_v10 = vld [vmem:[%s1992_s2 + $0x20] sm:$0xff]  ;;  %v138_v11 = vld [vmem:[%s1992_s2 + $0x30] sm:$0xff]  ;;  %v141_v12 = vld [vmem:[%s1992_s2 + $0x48] sm:$0xff] }
   0x4   :  { %1377 = vmatprep.subr.bf16.mxu1 %v1649_v4  ;;  %v143_v13 = vld [vmem:[%s1992_s2 + $0x58] sm:$0xff]  ;;  %v1678_v14 = vpack.c.bf16 %v138_v11, %v136_v10  ;;  %v35_v15 = vld [vmem:[%s1993_s1 + $0x8] sm:$0xff]  ;;  %v34_v16 = vld [vmem:[%s1993_s1] sm:$0xff]  ;;  %v40_v31 = vsub.s32 0, %v39_v29  ;;  %v44_v34 = vsub.s32 1, %v39_v29  ;;  %v1756_v40 = vadd.s32 128, %v149_v37 }
   0x5   :  { %1379 = vmatpush1.bf16.msra.mxu1 %v1660_v8  ;;  %v1687_v17 = vpack.c.bf16 %v143_v13, %v141_v12  ;;  %v140_v18 = vld [vmem:[%s1992_s2 + $0x40] sm:$0xff]  ;;  %v142_v19 = vld [vmem:[%s1992_s2 + $0x50] sm:$0xff]  ;;  %55 = vmatprep.subr.mxu0 %v35_v15  ;;  %v145_v21 = vld [vmem:[%s1992_s2 + $0x68] sm:$0xff] }
   0x6   :  { %1381 = vmatprep.subr.bf16.mxu1 %v1662_v9  ;;  %v32_v20 = vld [vmem:[%s1994_s0] sm:$0xff]  ;;  %56 = vmatpush1.msra.mxu0 %v34_v16  ;;  %v147_v22 = vld [vmem:[%s1992_s2 + $0x78] sm:$0xff]  ;;  %v1707_v23 = vpack.c.bf16 %v142_v19, %v140_v18  ;;  %v146_v26 = vld [vmem:[%s1992_s2 + $0x70] sm:$0xff]  ;;  %vm154_vm1 = vcmp.lt.s32.totalorder %v1756_v40, 192 }
   0x7   :  { %1308 = vmatmul.mubr.msk.f32.vlgmr.msra.gmra.mrb[0].mxu0 %vm48_vm0, %v32_v20  ;;  %1393 = vmatprep.subr.bf16.mxu0 %v1649_v4  ;;  %v1711_v24 = vpack.c.bf16 %v147_v22, %v145_v21  ;;  %v144_v25 = vld [vmem:[%s1992_s2 + $0x60] sm:$0xff]  ;;  %v33_v56 = vld [vmem:[%s1994_s0 + $0x8] sm:$0xff]  ;;  %s1587_s0 = smov 32  }
   0x8   :  { %1395 = vmatpush1.bf16.msra.mxu0 %v1660_v8  ;;  %125 = vmatprep.mubr.f32.mxu0 %v1585_v3  ;;  %v1722_v27 = vpack.c.bf16 %v146_v26, %v144_v25  ;;  %v36_v33 = vld [vmem:[%s1995_s3] sm:$0x3]  ;;  %s1586_s3 = smov 64  }
   0x9   :  { %1383 = vmatpush1.bf16.msra.mxu1 %v1678_v14  ;;  %1397 = vmatprep.subr.bf16.mxu0 %v1662_v9  ;;  %v1746_v35 = vrot.slane %v36_v33, %v40_v31  ;;  %v1748_v36 = vrot.slane %v36_v33, %v44_v34  ;;  %v1024_v40 = vld [vmem:[%s1996_s5] sm:$0xff] }
   0xa   :  { %1385 = vmatprep.subr.bf16.mxu1 %v1687_v17 }
   0xb   :  { %1309 = vmatmul.mubr.msk.f32.gmra.mrb[2].mxu0 %vm48_vm0, %v33_v56 }
   0xc   :  { %1399 = vmatpush1.bf16.msra.mxu0 %v1678_v14  ;;  %335 = vmatprep.mubr.f32.mxu0 %v1585_v3 }
   0xd   :  { %1387 = vmatpush1.bf16.msra.mxu1 %v1707_v23  ;;  %1401 = vmatprep.subr.bf16.mxu0 %v1687_v17 }
   0xe   :  { %1389 = vmatprep.subr.bf16.mxu1 %v1711_v24 }
  0x10   :  { %1403 = vmatpush1.bf16.msra.mxu0 %v1707_v23 }
  0x11   :  { %1391 = vmatpush1.bf16.msra.mxu1 %v1722_v27  ;;  %1405 = vmatprep.subr.bf16.mxu0 %v1711_v24 }
  0x12   :  { %1409 = vmatprep.subr.bf16.mxu1 %v1649_v4 }
  0x14   :  { %226 = vmatmul.mubr.f32.vlgmr.msra.gmra.mrb[0].mxu1 %v1585_v3  ;;  %1407 = vmatpush1.bf16.msra.mxu0 %v1722_v27 }
  0x15   :  { %1411 = vmatpush1.bf16.msra.mxu1 %v1660_v8  ;;  %442 = vmatprep.mubr.f32.mxu1 %v1585_v3 }
  0x16   :  { %1413 = vmatprep.subr.bf16.mxu1 %v1662_v9  ;;  %1425 = vmatprep.subr.bf16.mxu0 %v1649_v4 }
  0x19   :  { %1415 = vmatpush1.bf16.msra.mxu1 %v1678_v14 }
  0x1a   :  { %1417 = vmatprep.subr.bf16.mxu1 %v1687_v17 }
  0x1d   :  { %1419 = vmatpush1.bf16.msra.mxu1 %v1707_v23 }
  0x1e   :  { %1421 = vmatprep.subr.bf16.mxu1 %v1711_v24 }
  0x21   :  { %1423 = vmatpush1.bf16.msra.mxu1 %v1722_v27 }
  0x22   :  { %1441 = vmatprep.subr.bf16.mxu1 %v1649_v4 }
  0xda   :  { %v121_v30 = vpop.f32.mrb[0].mxu0 }
  0xdb   :  { %v123_v32 = vpop.f32.mrb[1].mxu0  ;;  %v1751_v38 = vadd.f32 %v121_v30, %v1746_v35 }
  0xdc   :  { %v1754_v39 = vadd.f32 %v123_v32, %v1748_v36 }
  0xdd   :  { %v265_v1 = vrot.slane %v1751_v38, 2  ;;  %v372_v33 = vrot.slane %v1751_v38, 4 }
  0xde   :  { %v1775_v62 = vpop.f32.mrb[2].mxu0  ;;  %v266_v5 = vrot.slane %v1754_v39, 2  ;;  %v373_v37 = vrot.slane %v1754_v39, 4 }
  0xdf   :  { %v1777_v63 = vpop.f32.mrb[3].mxu0 }
  0xe7   :  { %v227_v41 = vpop.f32.mrb[0].mxu1 }
  0xe8   :  { %v228_v42 = vadd.f32 %v227_v41, %v1751_v38  ;;  %v229_v43 = vpop.f32.mrb[1].mxu1 }
  0xe9   :  { %v230_v44 = vadd.f32 %v229_v43, %v1754_v39 }
  0xea   :  { %v232_v45 = vmul.f32 0.5, %v228_v42 }
  0xeb   :  { %v233_v46 = vmul.f32 0.5, %v230_v44 }
  0xec   :  { %1533 = vtanh.f32 %v232_v45 }
  0xed   :  { %v235_v47 = vsel %vm154_vm1, %v230_v44, %v233_v46 }
  0xee   :  { %1535 = vtanh.f32 %v235_v47 }
  0xf6   :  { %v1534_v48 = vpop.eup %1533 }
  0xf7   :  { %v238_v50 = vadd.f32 1.0, %v1534_v48 }
  0xf8   :  { %v1536_v49 = vpop.eup %1535 }
  0xf9   :  { %v239_v51 = vadd.f32 1.0, %v1536_v49  ;;  %v240_v53 = vmul.f32 0.5, %v238_v50 }
  0xfb   :  { %v241_v52 = vmul.f32 0.5, %v239_v51  ;;  %v244_v57 = vmul.f32 0.0, %v240_v53 }
  0xfd   :  { %v243_v54 = vsel %vm154_vm1, %v1536_v49, %v241_v52 }
  0xfe   :  { %v245_v55 = vmul.f32 %v243_v54, %v240_v53 }
 0x100   :  { %247 = vrot.lane.b32.xlu0 %v245_v55, %s1586_s3 }
 0x172   :  { %v248_v58 = vpop.permute.xlu0 %247 }
 0x173   :  { %v250_v59 = vadd.f32 %v248_v58, %v244_v57 }
 0x175   :  { %1537 = vtanh.f32 %v250_v59 }
 0x17f   :  { %v1538_v60 = vpop.eup %1537 }
 0x180   :  { %v1771_v61 = vmul.f32 %v1538_v60, %v243_v54 }
 0x182   :  { %254 = vrot.lane.b32.xlu0 %v1771_v61, %s1586_s3 }
 0x1f4   :  { %v255_v0 = vpop.permute.xlu0 %254 }
 0x1f5   :  { %258 = vst.msk [vmem:[#allocation2] sm:$0x3] %vm257_vm2, %v255_v0  ;;  %1310 = vmatmul.mubr.msk.f32.vlgmr.msra.gmra.mrb[4].mxu0 %vm157_vm3, %v255_v0  ;;  %v479_v0 = vrot.slane %v1751_v38, 6 }
 0x1f6   :  { %1427 = vmatpush1.bf16.msra.mxu0 %v1660_v8  ;;  %549 = vmatprep.mubr.f32.mxu0 %v1585_v3 }
 0x1f7   :  { %1429 = vmatprep.subr.bf16.mxu0 %v1662_v9 }
 0x1fa   :  { %1431 = vmatpush1.bf16.msra.mxu0 %v1678_v14 }
 0x1fb   :  { %1433 = vmatprep.subr.bf16.mxu0 %v1687_v17 }
 0x1fe   :  { %1435 = vmatpush1.bf16.msra.mxu0 %v1707_v23 }
 0x1ff   :  { %1437 = vmatprep.subr.bf16.mxu0 %v1711_v24 }
 0x202   :  { %1439 = vmatpush1.bf16.msra.mxu0 %v1722_v27 }
 0x203   :  { %1457 = vmatprep.subr.bf16.mxu0 %v1649_v4 }
 0x2c8   :  { %v337_v2 = vpop.f32.mrb[4].mxu0 }
 0x2c9   :  { %v338_v6 = vadd.f32 %v337_v2, %v265_v1  ;;  %v339_v7 = vpop.f32.mrb[5].mxu0  ;;  %v480_v2 = vrot.slane %v1754_v39, 6 }
 0x2ca   :  { %v340_v10 = vadd.f32 %v339_v7, %v266_v5 }
 0x2cb   :  { %v342_v11 = vmul.f32 0.5, %v338_v6 }
 0x2cc   :  { %v343_v12 = vmul.f32 0.5, %v340_v10 }
 0x2cd   :  { %1539 = vtanh.f32 %v342_v11 }
 0x2ce   :  { %v345_v13 = vsel %vm154_vm1, %v340_v10, %v343_v12 }
 0x2cf   :  { %1541 = vtanh.f32 %v345_v13 }
 0x2d7   :  { %v1540_v15 = vpop.eup %1539 }
 0x2d8   :  { %v348_v18 = vadd.f32 1.0, %v1540_v15 }
 0x2d9   :  { %v1542_v16 = vpop.eup %1541 }
 0x2da   :  { %v349_v19 = vadd.f32 1.0, %v1542_v16  ;;  %v350_v21 = vmul.f32 0.5, %v348_v18 }
 0x2dc   :  { %v351_v20 = vmul.f32 0.5, %v349_v19  ;;  %v354_v26 = vmul.f32 %v350_v21, %v250_v59 }
 0x2de   :  { %v353_v22 = vsel %vm154_vm1, %v1542_v16, %v351_v20 }
 0x2df   :  { %v355_v25 = vmul.f32 %v353_v22, %v350_v21 }
 0x2e1   :  { %357 = vrot.lane.b32.xlu1 %v355_v25, %s1586_s3 }
 0x353   :  { %v358_v28 = vpop.permute.xlu1 %357 }
 0x354   :  { %v360_v29 = vadd.f32 %v358_v28, %v354_v26 }
 0x356   :  { %1543 = vtanh.f32 %v360_v29 }
 0x360   :  { %v1544_v30 = vpop.eup %1543 }
 0x361   :  { %v1797_v31 = vmul.f32 %v1544_v30, %v353_v22  ;;  %v1861_v30 = vadd.f32 %v1777_v63, %v1748_v36 }
 0x363   :  { %364 = vrot.lane.b32.xlu1 %v1797_v31, %s1586_s3 }
 0x3d5   :  { %v365_v32 = vpop.permute.xlu1 %364 }
 0x3d6   :  { %367 = vst.msk [vmem:[#allocation2 + $0x2] sm:$0x3] %vm257_vm2, %v365_v32  ;;  %1311 = vmatmul.mubr.msk.f32.vlgmr.msra.gmra.mrb[2].mxu1 %vm157_vm3, %v365_v32 }
 0x3d7   :  { %1443 = vmatpush1.bf16.msra.mxu1 %v1660_v8  ;;  %652 = vmatprep.mubr.f32.mxu1 %v1585_v3 }
 0x3d8   :  { %1445 = vmatprep.subr.bf16.mxu1 %v1662_v9 }
 0x3db   :  { %1447 = vmatpush1.bf16.msra.mxu1 %v1678_v14 }
 0x3dc   :  { %1449 = vmatprep.subr.bf16.mxu1 %v1687_v17 }
 0x3df   :  { %1451 = vmatpush1.bf16.msra.mxu1 %v1707_v23 }
 0x3e0   :  { %1453 = vmatprep.subr.bf16.mxu1 %v1711_v24 }
 0x3e3   :  { %1455 = vmatpush1.bf16.msra.mxu1 %v1722_v27 }
 0x3e4   :  { %1473 = vmatprep.subr.bf16.mxu1 %v1649_v4 }
 0x4a9   :  { %v444_v34 = vpop.f32.mrb[2].mxu1 }
 0x4aa   :  { %v445_v41 = vadd.f32 %v444_v34, %v372_v33  ;;  %v446_v42 = vpop.f32.mrb[3].mxu1 }
 0x4ab   :  { %v447_v43 = vadd.f32 %v446_v42, %v373_v37 }
 0x4ac   :  { %v449_v44 = vmul.f32 0.5, %v445_v41 }
 0x4ad   :  { %v450_v45 = vmul.f32 0.5, %v447_v43 }
 0x4ae   :  { %1545 = vtanh.f32 %v449_v44 }
 0x4af   :  { %v452_v46 = vsel %vm154_vm1, %v447_v43, %v450_v45 }
 0x4b0   :  { %1547 = vtanh.f32 %v452_v46 }
 0x4b8   :  { %v1546_v47 = vpop.eup %1545 }
 0x4b9   :  { %v455_v49 = vadd.f32 1.0, %v1546_v47 }
 0x4ba   :  { %v1548_v48 = vpop.eup %1547 }
 0x4bb   :  { %v456_v50 = vadd.f32 1.0, %v1548_v48  ;;  %v457_v52 = vmul.f32 0.5, %v455_v49 }
 0x4bd   :  { %v458_v51 = vmul.f32 0.5, %v456_v50  ;;  %v461_v55 = vmul.f32 %v457_v52, %v360_v29  ;;  %v1857_v29 = vadd.f32 %v1775_v62, %v1746_v35 }
 0x4bf   :  { %v460_v53 = vsel %vm154_vm1, %v1548_v48, %v458_v51 }
 0x4c0   :  { %v462_v54 = vmul.f32 %v460_v53, %v457_v52 }
 0x4c2   :  { %464 = vrot.lane.b32.xlu0 %v462_v54, %s1586_s3  ;;  %v691_v54 = vrot.slane %v1857_v29, 2 }
 0x534   :  { %v465_v56 = vpop.permute.xlu0 %464 }
 0x535   :  { %v467_v57 = vadd.f32 %v465_v56, %v461_v55  ;;  %v692_v56 = vrot.slane %v1861_v30, 2 }
 0x537   :  { %1549 = vtanh.f32 %v467_v57 }
 0x541   :  { %v1550_v58 = vpop.eup %1549 }
 0x542   :  { %v1819_v59 = vmul.f32 %v1550_v58, %v460_v53 }
 0x544   :  { %471 = vrot.lane.b32.xlu1 %v1819_v59, %s1586_s3 }
 0x5b6   :  { %v472_v60 = vpop.permute.xlu1 %471 }
 0x5b7   :  { %474 = vst.msk [vmem:[#allocation2 + $0x4] sm:$0x3] %vm257_vm2, %v472_v60  ;;  %1312 = vmatmul.mubr.msk.f32.vlgmr.msra.gmra.mrb[6].mxu0 %vm157_vm3, %v472_v60 }
 0x5b8   :  { %1459 = vmatpush1.bf16.msra.mxu0 %v1660_v8  ;;  %761 = vmatprep.mubr.f32.mxu0 %v1585_v3 }
 0x5b9   :  { %1461 = vmatprep.subr.bf16.mxu0 %v1662_v9 }
 0x5bc   :  { %1463 = vmatpush1.bf16.msra.mxu0 %v1678_v14 }
 0x5bd   :  { %1465 = vmatprep.subr.bf16.mxu0 %v1687_v17 }
 0x5c0   :  { %1467 = vmatpush1.bf16.msra.mxu0 %v1707_v23 }
 0x5c1   :  { %1469 = vmatprep.subr.bf16.mxu0 %v1711_v24 }
 0x5c4   :  { %1471 = vmatpush1.bf16.msra.mxu0 %v1722_v27 }
 0x5c5   :  { %1489 = vmatprep.subr.bf16.mxu0 %v1649_v4 }
 0x68a   :  { %v551_v1 = vpop.f32.mrb[6].mxu0 }
 0x68b   :  { %v552_v5 = vadd.f32 %v551_v1, %v479_v0  ;;  %v553_v6 = vpop.f32.mrb[7].mxu0 }
 0x68c   :  { %v554_v7 = vadd.f32 %v553_v6, %v480_v2 }
 0x68d   :  { %v556_v10 = vmul.f32 0.5, %v552_v5 }
 0x68e   :  { %v557_v11 = vmul.f32 0.5, %v554_v7 }
 0x68f   :  { %1551 = vtanh.f32 %v556_v10 }
 0x690   :  { %v559_v12 = vsel %vm154_vm1, %v554_v7, %v557_v11 }
 0x691   :  { %1553 = vtanh.f32 %v559_v12 }
 0x699   :  { %v1552_v13 = vpop.eup %1551 }
 0x69a   :  { %v562_v16 = vadd.f32 1.0, %v1552_v13  ;;  %v798_v13 = vrot.slane %v1857_v29, 4 }
 0x69b   :  { %v1554_v15 = vpop.eup %1553 }
 0x69c   :  { %v563_v18 = vadd.f32 1.0, %v1554_v15  ;;  %v564_v19 = vmul.f32 0.5, %v562_v16  ;;  %v799_v16 = vrot.slane %v1861_v30, 4 }
 0x69e   :  { %v565_v4 = vmul.f32 0.5, %v563_v18  ;;  %v568_v20 = vmul.f32 %v564_v19, %v467_v57 }
 0x6a0   :  { %v567_v38 = vsel %vm154_vm1, %v1554_v15, %v565_v4 }
 0x6a1   :  { %v569_v39 = vmul.f32 %v567_v38, %v564_v19 }
 0x6a3   :  { %571 = vrot.lane.b32.xlu0 %v569_v39, %s1586_s3 }
 0x715   :  { %v572_v21 = vpop.permute.xlu0 %571 }
 0x716   :  { %v574_v22 = vadd.f32 %v572_v21, %v568_v20 }
 0x718   :  { %1555 = vtanh.f32 %v574_v22 }
 0x722   :  { %v1556_v25 = vpop.eup %1555 }
 0x723   :  { %v1841_v26 = vmul.f32 %v1556_v25, %v567_v38 }
 0x725   :  { %578 = vrot.lane.b32.xlu1 %v1841_v26, %s1586_s3 }
 0x797   :  { %v579_v28 = vpop.permute.xlu1 %578 }
 0x798   :  { %581 = vst.msk [vmem:[#allocation2 + $0x6] sm:$0x3] %vm257_vm2, %v579_v28  ;;  %1313 = vmatmul.mubr.msk.f32.vlgmr.msra.gmra.mrb[4].mxu1 %vm157_vm3, %v579_v28 }
 0x799   :  { %1475 = vmatpush1.bf16.msra.mxu1 %v1660_v8  ;;  %868 = vmatprep.mubr.f32.mxu1 %v1585_v3 }
 0x79a   :  { %1477 = vmatprep.subr.bf16.mxu1 %v1662_v9 }
 0x79d   :  { %1479 = vmatpush1.bf16.msra.mxu1 %v1678_v14 }
 0x79e   :  { %1481 = vmatprep.subr.bf16.mxu1 %v1687_v17 }
 0x7a1   :  { %1483 = vmatpush1.bf16.msra.mxu1 %v1707_v23 }
 0x7a2   :  { %1485 = vmatprep.subr.bf16.mxu1 %v1711_v24 }
 0x7a5   :  { %1487 = vmatpush1.bf16.msra.mxu1 %v1722_v27 }
 0x86b   :  { %v654_v32 = vpop.f32.mrb[4].mxu1 }
 0x86c   :  { %v655_v33 = vadd.f32 %v654_v32, %v1857_v29  ;;  %v656_v34 = vpop.f32.mrb[5].mxu1 }
 0x86d   :  { %v657_v37 = vadd.f32 %v656_v34, %v1861_v30 }
 0x86e   :  { %v659_v41 = vmul.f32 0.5, %v655_v33 }
 0x86f   :  { %v660_v42 = vmul.f32 0.5, %v657_v37 }
 0x870   :  { %1557 = vtanh.f32 %v659_v41 }
 0x871   :  { %v662_v43 = vsel %vm154_vm1, %v657_v37, %v660_v42 }
 0x872   :  { %1559 = vtanh.f32 %v662_v43 }
 0x87a   :  { %v1558_v44 = vpop.eup %1557 }
 0x87b   :  { %v665_v62 = vadd.f32 1.0, %v1558_v44 }
 0x87c   :  { %v1560_v35 = vpop.eup %1559 }
 0x87d   :  { %v666_v45 = vadd.f32 1.0, %v1560_v35  ;;  %v667_v36 = vmul.f32 0.5, %v665_v62 }
 0x87f   :  { %v668_v46 = vmul.f32 0.5, %v666_v45  ;;  %v671_v48 = vmul.f32 %v667_v36, %v574_v22 }
 0x881   :  { %v670_v63 = vsel %vm154_vm1, %v1560_v35, %v668_v46 }
 0x882   :  { %v672_v47 = vmul.f32 %v670_v63, %v667_v36 }
 0x884   :  { %674 = vrot.lane.b32.xlu0 %v672_v47, %s1586_s3  ;;  %v906_v47 = vrot.slane %v1861_v30, 6 }
 0x8f6   :  { %v675_v49 = vpop.permute.xlu0 %674 }
 0x8f7   :  { %v677_v50 = vadd.f32 %v675_v49, %v671_v48 }
 0x8f9   :  { %1561 = vtanh.f32 %v677_v50 }
 0x903   :  { %v1562_v51 = vpop.eup %1561 }
 0x904   :  { %v1870_v52 = vmul.f32 %v1562_v51, %v670_v63 }
 0x906   :  { %681 = vrot.lane.b32.xlu1 %v1870_v52, %s1586_s3 }
 0x978   :  { %v682_v53 = vpop.permute.xlu1 %681 }
 0x979   :  { %684 = vst.msk [vmem:[#allocation2 + $0x8] sm:$0x3] %vm257_vm2, %v682_v53  ;;  %1314 = vmatmul.mubr.msk.f32.vlgmr.msra.gmra.mrb[8].mxu0 %vm157_vm3, %v682_v53 }
 0x97a   :  { %1491 = vmatpush1.bf16.msra.mxu0 %v1660_v8  ;;  %975 = vmatprep.mubr.f32.mxu0 %v1585_v3 }
 0x97b   :  { %1493 = vmatprep.subr.bf16.mxu0 %v1662_v9 }
 0x97e   :  { %1495 = vmatpush1.bf16.msra.mxu0 %v1678_v14 }
 0x97f   :  { %1497 = vmatprep.subr.bf16.mxu0 %v1687_v17 }
 0x982   :  { %1499 = vmatpush1.bf16.msra.mxu0 %v1707_v23 }
 0x983   :  { %1501 = vmatprep.subr.bf16.mxu0 %v1711_v24 }
 0x986   :  { %1503 = vmatpush1.bf16.msra.mxu0 %v1722_v27 }
 0xa4c   :  { %v763_v55 = vpop.f32.mrb[8].mxu0 }
 0xa4d   :  { %v764_v8 = vadd.f32 %v763_v55, %v691_v54  ;;  %v765_v57 = vpop.f32.mrb[9].mxu0 }
 0xa4e   :  { %v766_v3 = vadd.f32 %v765_v57, %v692_v56 }
 0xa4f   :  { %v768_v58 = vmul.f32 0.5, %v764_v8 }
 0xa50   :  { %v769_v9 = vmul.f32 0.5, %v766_v3 }
 0xa51   :  { %1563 = vtanh.f32 %v768_v58 }
 0xa52   :  { %v771_v14 = vsel %vm154_vm1, %v766_v3, %v769_v9 }
 0xa53   :  { %1565 = vtanh.f32 %v771_v14 }
 0xa5b   :  { %v1564_v17 = vpop.eup %1563 }
 0xa5c   :  { %v774_v24 = vadd.f32 1.0, %v1564_v17 }
 0xa5d   :  { %v1566_v23 = vpop.eup %1565 }
 0xa5e   :  { %v775_v60 = vadd.f32 1.0, %v1566_v23  ;;  %v776_v0 = vmul.f32 0.5, %v774_v24 }
 0xa60   :  { %v777_v27 = vmul.f32 0.5, %v775_v60  ;;  %v780_v5 = vmul.f32 %v776_v0, %v677_v50  ;;  %v1027_v60 = vld [vmem:[%s1996_s5 + $0x18] sm:$0xff] }
 0xa62   :  { %v779_v1 = vsel %vm154_vm1, %v1566_v23, %v777_v27  ;;  %v1025_v23 = vld [vmem:[%s1996_s5 + $0x8] sm:$0xff] }
 0xa63   :  { %v781_v2 = vmul.f32 %v779_v1, %v776_v0  ;;  %v1504_v24 = vpack.c.bf16 %v1025_v23, %v1024_v40 }
 0xa65   :  { %783 = vrot.lane.b32.xlu0 %v781_v2, %s1586_s3  ;;  %1505 = vmatprep.subr.bf16.mxu1 %v1504_v24 }
 0xad7   :  { %v784_v6 = vpop.permute.xlu0 %783 }
 0xad8   :  { %v786_v7 = vadd.f32 %v784_v6, %v780_v5  ;;  %v1020_v5 = vld [vmem:[%s1997_s4] sm:$0xff]  ;;  %v1021_v6 = vld [vmem:[%s1997_s4 + $0x8] sm:$0xff] }
 0xada   :  { %1567 = vtanh.f32 %v786_v7 }
 0xae4   :  { %v1568_v10 = vpop.eup %1567 }
 0xae5   :  { %v1891_v11 = vmul.f32 %v1568_v10, %v779_v1  ;;  %v1202_v10 = vld [vmem:[%s1998_s7] sm:$0xff] }
 0xae7   :  { %790 = vrot.lane.b32.xlu1 %v1891_v11, %s1586_s3 }
 0xb59   :  { %v791_v12 = vpop.permute.xlu1 %790 }
 0xb5a   :  { %793 = vst.msk [vmem:[#allocation2 + $0xa] sm:$0x3] %vm257_vm2, %v791_v12  ;;  %1315 = vmatmul.mubr.msk.f32.vlgmr.msra.gmra.mrb[6].mxu1 %vm157_vm3, %v791_v12 }
 0xb5b   :  { %1507 = vmatpush3.bf16.msra.mxu1 %v1504_v24 }
 0xc2d   :  { %v870_v15 = vpop.f32.mrb[6].mxu1 }
 0xc2e   :  { %v871_v18 = vadd.f32 %v870_v15, %v798_v13  ;;  %v872_v4 = vpop.f32.mrb[7].mxu1 }
 0xc2f   :  { %v873_v19 = vadd.f32 %v872_v4, %v799_v16  ;;  %v1022_v4 = vld [vmem:[%s1997_s4 + $0x10] sm:$0xff] }
 0xc30   :  { %v875_v38 = vmul.f32 0.5, %v871_v18 }
 0xc31   :  { %v876_v39 = vmul.f32 0.5, %v873_v19 }
 0xc32   :  { %1569 = vtanh.f32 %v875_v38  ;;  %v1012_v38 = vld [vmem:[#allocation2] sm:$0xff] }
 0xc33   :  { %v878_v20 = vsel %vm154_vm1, %v873_v19, %v876_v39  ;;  %v1023_v19 = vld [vmem:[%s1997_s4 + $0x18] sm:$0xff] }
 0xc34   :  { %1571 = vtanh.f32 %v878_v20 }
 0xc3c   :  { %v1570_v21 = vpop.eup %1569 }
 0xc3d   :  { %v881_v25 = vadd.f32 1.0, %v1570_v21  ;;  %v1516_v21 = vpack.c.bf16 %v1023_v19, %v1022_v4 }
 0xc3e   :  { %v1572_v22 = vpop.eup %1571 }
 0xc3f   :  { %v882_v28 = vadd.f32 1.0, %v1572_v22  ;;  %v883_v33 = vmul.f32 0.5, %v881_v25 }
 0xc41   :  { %v884_v32 = vmul.f32 0.5, %v882_v28  ;;  %v887_v41 = vmul.f32 %v883_v33, %v786_v7  ;;  %v1512_v7 = vpack.c.bf16 %v1021_v6, %v1020_v5 }
 0xc43   :  { %v886_v34 = vsel %vm154_vm1, %v1572_v22, %v884_v32  ;;  %v1014_v22 = vmax.f32 %v1012_v38, 0.0  ;;  %v1204_v32 = vld [vmem:[%s1998_s7 + $0x10] sm:$0xff] }
 0xc44   :  { %v888_v37 = vmul.f32 %v886_v34, %v883_v33  ;;  %v1205_v33 = vld [vmem:[%s1998_s7 + $0x18] sm:$0xff] }
 0xc46   :  { %890 = vrot.lane.b32.xlu0 %v888_v37, %s1586_s3  ;;  %v1321_v37 = vld [vmem:[%s1999_s6] ss:$0 sm:$0xff] }
 0xcb8   :  { %v891_v42 = vpop.permute.xlu0 %890 }
 0xcb9   :  { %v893_v43 = vadd.f32 %v891_v42, %v887_v41 }
 0xcbb   :  { %1573 = vtanh.f32 %v893_v43 }
 0xcc5   :  { %v1574_v44 = vpop.eup %1573 }
 0xcc6   :  { %v895_v35 = vmul.f32 %v1574_v44, %v886_v34  ;;  %v1524_v34 = vpack.c.bf16 %v1205_v33, %v1204_v32 }
 0xcc8   :  { %897 = vrot.lane.b32.xlu1 %v895_v35, %s1586_s3 }
 0xccc   :  { %685 = vrot.lane.b32.xlu1 %v1870_v52, %s1587_s0 }
 0xcd0   :  { %901 = vrot.lane.b32.xlu1 %v895_v35, %s1587_s0 }
 0xcd4   :  { %259 = vrot.lane.b32.xlu1 %v1771_v61, %s1587_s0  ;;  %v905_v61 = vrot.slane %v1857_v29, 6 }
 0xcd8   :  { %475 = vrot.lane.b32.xlu1 %v1819_v59, %s1587_s0 }
 0xd3a   :  { %v898_v62 = vpop.permute.xlu1 %897 }
 0xd3b   :  { %900 = vst.msk [vmem:[#allocation2 + $0xc] sm:$0x3] %vm257_vm2, %v898_v62  ;;  %1316 = vmatmul.mubr.msk.f32.vlgmr.msra.gmra.mrb[10].mxu0 %vm157_vm3, %v898_v62 }
 0xd3e   :  { %v686_v45 = vpop.permute.xlu1 %685 }
 0xd3f   :  { %688 = vst.msk [vmem:[#allocation3 + $0x6] sm:$0x3] %vm257_vm2, %v686_v45  ;;  %v1322_v45 = vld [vmem:[%s2000_s8] ss:$0 sm:$0xff] }
 0xd42   :  { %v902_v46 = vpop.permute.xlu1 %901 }
 0xd43   :  { %904 = vst.msk [vmem:[#allocation3 + $0x2] sm:$0x3] %vm257_vm2, %v902_v46 }
 0xd46   :  { %v260_v36 = vpop.permute.xlu1 %259 }
 0xd47   :  { %262 = vst.msk [vmem:[#allocation3 + $0xe] sm:$0x3] %vm257_vm2, %v260_v36 }
 0xd4a   :  { %v476_v63 = vpop.permute.xlu1 %475 }
 0xd4b   :  { %478 = vst.msk [vmem:[#allocation3 + $0xa] sm:$0x3] %vm257_vm2, %v476_v63 }
 0xe0e   :  { %v977_v59 = vpop.f32.mrb[10].mxu0 }
 0xe0f   :  { %v978_v48 = vadd.f32 %v977_v59, %v905_v61  ;;  %v979_v49 = vpop.f32.mrb[11].mxu0 }
 0xe10   :  { %v980_v50 = vadd.f32 %v979_v49, %v906_v47 }
 0xe11   :  { %v982_v51 = vmul.f32 0.5, %v978_v48 }
 0xe12   :  { %v983_v52 = vmul.f32 0.5, %v980_v50 }
 0xe13   :  { %1575 = vtanh.f32 %v982_v51 }
 0xe14   :  { %v985_v53 = vsel %vm154_vm1, %v980_v50, %v983_v52 }
 0xe15   :  { %1577 = vtanh.f32 %v985_v53 }
 0xe1d   :  { %v1576_v54 = vpop.eup %1575 }
 0xe1e   :  { %v988_v56 = vadd.f32 1.0, %v1576_v54 }
 0xe1f   :  { %v1578_v55 = vpop.eup %1577 }
 0xe20   :  { %v989_v8 = vadd.f32 1.0, %v1578_v55  ;;  %v990_v3 = vmul.f32 0.5, %v988_v56 }
 0xe22   :  { %v991_v57 = vmul.f32 0.5, %v989_v8  ;;  %v994_v58 = vmul.f32 %v990_v3, %v893_v43 }
 0xe24   :  { %v993_v29 = vsel %vm154_vm1, %v1578_v55, %v991_v57 }
 0xe25   :  { %v995_v30 = vmul.f32 %v993_v29, %v990_v3 }
 0xe27   :  { %997 = vrot.lane.b32.xlu0 %v995_v30, %s1586_s3 }
 0xe2b   :  { %794 = vrot.lane.b32.xlu0 %v1891_v11, %s1587_s0  ;;  %v1203_v11 = vld [vmem:[%s1998_s7 + $0x8] sm:$0xff] }
 0xe2c   :  { %v1520_v12 = vpack.c.bf16 %v1203_v11, %v1202_v10 }
 0xe2e   :  { %1521 = vmatprep.subr.bf16.mxu0 %v1520_v12 }
 0xe2f   :  { %368 = vrot.lane.b32.xlu0 %v1797_v31, %s1587_s0  ;;  %v1026_v31 = vld [vmem:[%s1996_s5 + $0x10] sm:$0xff]  ;;  %1523 = vmatpush3.bf16.msra.mxu0 %v1520_v12 }
 0xe30   :  { %v1508_v0 = vpack.c.bf16 %v1027_v60, %v1026_v31  ;;  %1525 = vmatprep.subr.bf16.mxu0 %v1524_v34 }
 0xe32   :  { %1509 = vmatprep.subr.bf16.mxu1 %v1508_v0 }
 0xe33   :  { %1511 = vmatpush3.bf16.msra.mxu1 %v1508_v0  ;;  %1527 = vmatpush3.bf16.msra.mxu0 %v1524_v34 }
 0xe34   :  { %1513 = vmatprep.subr.bf16.mxu1 %v1512_v7 }
 0xe99   :  { %v998_v9 = vpop.permute.xlu0 %997 }
 0xe9a   :  { %v1000_v14 = vadd.f32 %v998_v9, %v994_v58 }
 0xe9c   :  { %1579 = vtanh.f32 %v1000_v14 }
 0xe9d   :  { %v795_v17 = vpop.permute.xlu0 %794 }
 0xe9e   :  { %797 = vst.msk [vmem:[#allocation3 + $0x4] sm:$0x3] %vm257_vm2, %v795_v17 }
 0xea1   :  { %v369_v27 = vpop.permute.xlu0 %368 }
 0xea2   :  { %371 = vst.msk [vmem:[#allocation3 + $0xc] sm:$0x3] %vm257_vm2, %v369_v27 }
 0xea6   :  { %v1580_v1 = vpop.eup %1579 }
 0xea7   :  { %v1002_v2 = vmul.f32 %v1580_v1, %v993_v29 }
 0xea9   :  { %1004 = vrot.lane.b32.xlu1 %v1002_v2, %s1586_s3  ;;  %1008 = vrot.lane.b32.xlu0 %v1002_v2, %s1587_s0 }
 0xead   :  { %582 = vrot.lane.b32.xlu0 %v1841_v26, %s1587_s0 }
 0xf1b   :  { %v1009_v13 = vpop.permute.xlu0 %1008  ;;  %v1005_v15 = vpop.permute.xlu1 %1004 }
 0xf1c   :  { %1011 = vst.msk [vmem:[#allocation3] sm:$0x3] %vm257_vm2, %v1009_v13  ;;  %1007 = vst.msk [vmem:[#allocation2 + $0xe] sm:$0x3] %vm257_vm2, %v1005_v15 }
 0xf1f   :  { %v583_v16 = vpop.permute.xlu0 %582 }
 0xf20   :  { %585 = vst.msk [vmem:[#allocation3 + $0x8] sm:$0x3] %vm257_vm2, %v583_v16 }
 0xf23   :  { %v1016_v26 = vld [vmem:[#allocation3] sm:$0xff]  ;;  %v1013_v25 = vld [vmem:[#allocation2 + $0x8] sm:$0xff] }
 0xf24   :  { %v1018_v18 = vmax.f32 %v1016_v26, 0.0  ;;  %v1015_v28 = vmax.f32 %v1013_v25, 0.0 }
 0xf26   :  { %1351 = vmatprep.mubr.msk.f32.mxu1 %vm1028_vm4, %v1018_v18 }
 0xf27   :  { %v1017_v39 = vld [vmem:[#allocation3 + $0x8] sm:$0xff] }
 0xf28   :  { %v1019_v20 = vmax.f32 %v1017_v39, 0.0 }
 0xf2a   :  { %1352 = vmatmul.mubr.msk.f32.vlgmr.msra.gmra.mrb[8].mxu1 %vm1028_vm4, %v1019_v20 }
 0xf2b   :  { %1515 = vmatpush3.bf16.msra.mxu1 %v1512_v7  ;;  %1362 = vmatprep.mubr.msk.f32.mxu1 %vm1028_vm4, %v1014_v22 }
 0xf2c   :  { %1517 = vmatprep.subr.bf16.mxu1 %v1516_v21 }
 0xf2f   :  { %1519 = vmatpush3.bf16.msra.mxu1 %v1516_v21 }
 0xf32   :  { %1363 = vmatmul.mubr.msk.f32.vlgmr.msra.gmra.mrb[8].mxu1 %vm1028_vm4, %v1015_v28 }
0x1005   :  { %v1364_v41 = vpop.f32.mrb[8].mxu1 }
0x1006   :  { %v1199_v42 = vadd.f32 %v1364_v41, %v1321_v37  ;;  %v1182_v43 = vpop.f32.mrb[9].mxu1 }
0x1007   :  { %v1198_v44 = vadd.f32 %v1321_v37, %v1182_v43 }
0x1008   :  { %v1201_v62 = vmax.f32 %v1199_v42, 0.0 }
0x1009   :  { %v1200_v35 = vmax.f32 %v1198_v44, 0.0 }
0x100b   :  { %1373 = vmatprep.mubr.msk.f32.mxu0 %vm1028_vm4, %v1200_v35 }
0x100c   :  { %1374 = vmatmul.mubr.msk.f32.vlgmr.msra.gmra.mrb[12].mxu0 %vm1028_vm4, %v1201_v62 }
0x10df   :  { %v1375_v46 = vpop.f32.mrb[12].mxu0 }
0x10e0   :  { %v1291_v36 = vadd.f32 %v1375_v46, %v1322_v45  ;;  %v1285_v63 = vpop.f32.mrb[13].mxu0 }
0x10e1   :  { %v1286_v61 = vadd.f32 %v1322_v45, %v1285_v63 }
0x10e2   :  { %v1295_v59 = vmul.f32 0.5, %v1291_v36 }
0x10e3   :  { %v1294_v47 = vmul.f32 0.5, %v1286_v61 }
0x10e4   :  { %1581 = vtanh.f32 %v1295_v59 }
0x10e5   :  { %1583 = vtanh.f32 %v1294_v47 }
0x10ee   :  { %v1582_v48 = vpop.eup %1581 }
0x10ef   :  { %v1584_v49 = vpop.eup %1583  ;;  %v1299_v50 = vadd.f32 1.0, %v1582_v48 }
0x10f0   :  { %v1298_v51 = vadd.f32 1.0, %v1584_v49 }
0x10f1   :  { %v1301_v52 = vmul.f32 0.5, %v1299_v50 }
0x10f2   :  { %v1300_v53 = vmul.f32 0.5, %v1298_v51 }
0x10f3   :  { %1303 = vst [vmem:[%s2001_s9 + $0x8] sm:$0xff] %v1301_v52 }
0x10f4   :  { %1302 = vst [vmem:[%s2001_s9] sm:$0xff] %v1300_v53 }

</bundles_post_ra>
